<compile_context>
chip_gen: v7x
topology: tpu7x:2x2x1
jax: 0.10.0
libtpu: 0.0.40
codegen_flags: <defaults>
</compile_context>

<pallas_src>
import jax
import jax.numpy as jnp
from jax.experimental import pallas as pl
from jax.experimental.pallas import tpu as pltpu


def build_grid(resolution):
    """JAX equivalent of the PyTorch build_grid, returned as [H, W, 2*len(res)]."""
    axes = [jnp.linspace(0.0, 1.0, r) for r in resolution]
    mesh = jnp.stack(jnp.meshgrid(*axes, indexing="ij"), axis=-1)      # [H, W, 2]
    mesh = mesh.reshape(resolution[0], resolution[1], -1)
    return jnp.concatenate([mesh, 1.0 - mesh], axis=-1)                # [H, W, 4]


def _soft_pos_embed_kernel(g_ref, w_ref, x_ref, o_ref, emb_ref):
    # g_ref  : [KPAD, T]  grid features (+ ones row for bias, zero padded to 8 rows)
    # w_ref  : [C, KPAD]  weight with bias folded in as a column
    # x_ref  : [C, T]     one batch element, batch dim squeezed away
    # o_ref  : [C, T]
    # emb_ref: [C, T]     f32 VMEM scratch, persistent across grid steps.
    #
    # Batch axis (grid axis 1) is sequential ("arbitrary"), so the embedding for the
    # current HW tile is computed exactly once and reused for all batch elements.
    @pl.when(pl.program_id(1) == 0)
    def _():
        emb_ref[...] = jnp.dot(
            w_ref[...], g_ref[...], preferred_element_type=jnp.float32
        )

    # Streaming add: accumulate in f32, cast once at the store.
    o_ref[...] = (x_ref[...].astype(jnp.float32) + emb_ref[...]).astype(o_ref.dtype)


def _pick_hw_tile(hw_pad, max_tile=2048):
    """Largest multiple of 128 that divides hw_pad and is <= max_tile."""
    if hw_pad <= max_tile:
        return hw_pad
    t = (max_tile // 128) * 128
    while hw_pad % t != 0:
        t -= 128
    return t


def soft_position_embed(inputs_nchw, weight, bias, grid_hwc):
    """inputs_nchw: [B, C, H, W]; weight: [C, 4]; bias: [C]; grid_hwc: [H, W, 4]."""
    B, C, H, W = inputs_nchw.shape
    HW = H * W
    K = weight.shape[1]
    KPAD = 8  # sublane-aligned contraction depth (4 features + 1 ones row + 3 zeros)

    # Pad the spatial dim to a lane-dense multiple of 128 and pick an HW tile.
    hw_pad = ((HW + 127) // 128) * 128
    T = _pick_hw_tile(hw_pad)
    n_hw = hw_pad // T

    x = inputs_nchw.reshape(B, C, HW)
    if hw_pad != HW:
        x = jnp.pad(x, ((0, 0), (0, 0), (0, hw_pad - HW)))

    # Grid features [K, HW] + ones row (for bias) + zero padding to KPAD sublanes.
    g = grid_hwc.reshape(HW, K).T.astype(jnp.float32)                      # [K, HW]
    g_full = jnp.concatenate(
        [g, jnp.ones((1, HW), jnp.float32),
         jnp.zeros((KPAD - K - 1, HW), jnp.float32)], axis=0)              # [KPAD, HW]
    if hw_pad != HW:
        g_full = jnp.pad(g_full, ((0, 0), (0, hw_pad - HW)))

    # Weight [C, K] with the bias folded in as column K, zero padded to KPAD columns.
    w_full = jnp.concatenate(
        [weight.astype(jnp.float32),
         bias.reshape(C, 1).astype(jnp.float32),
         jnp.zeros((C, KPAD - K - 1), jnp.float32)], axis=1)               # [C, KPAD]

    out = pl.pallas_call(
        _soft_pos_embed_kernel,
        out_shape=jax.ShapeDtypeStruct((B, C, hw_pad), inputs_nchw.dtype),
        grid_spec=pltpu.PrefetchScalarGridSpec(
            num_scalar_prefetch=0,
            grid=(n_hw, B),  # HW tiles outer (parallel), batch inner (arbitrary)
            in_specs=[
                pl.BlockSpec((KPAD, T), lambda hw, b: (0, hw)),        # grid features
                pl.BlockSpec((C, KPAD), lambda hw, b: (0, 0)),         # weight (+bias)
                pl.BlockSpec((pl.Squeezed(), C, T),
                             lambda hw, b: (b, 0, hw)),                # x, per batch
            ],
            out_specs=pl.BlockSpec((pl.Squeezed(), C, T),
                                   lambda hw, b: (b, 0, hw)),
            scratch_shapes=[pltpu.VMEM((C, T), jnp.float32)],          # hoisted emb
        ),
        compiler_params=pltpu.CompilerParams(
            dimension_semantics=("parallel", "arbitrary"),
        ),
    )(g_full, w_full, x)

    if hw_pad != HW:
        out = out[:, :, :HW]
    return out.reshape(B, C, H, W)


if __name__ == "__main__":
    # Small shapes consistent with the module: dim=32, res=(16,16), batch=2.
    B, DIM, H, W = 2, 32, 16, 16
    res = (H, W)
    in_features = len(res) * 2  # 4

    key = jax.random.PRNGKey(0)
    k_x, k_w, k_b = jax.random.split(key, 3)

    # Deterministic parameter init (shapes match nn.Linear(4, dim)).
    bound = 1.0 / jnp.sqrt(in_features)
    weight = jax.random.uniform(k_w, (DIM, in_features), jnp.float32, -bound, bound)
    bias = jax.random.uniform(k_b, (DIM,), jnp.float32, -bound, bound)

    grid_hwc = build_grid(res)                                   # [H, W, 4]
    x = jax.random.normal(k_x, (B, DIM, H, W), jnp.float32)      # NCHW inputs

    out = soft_position_embed(x, weight, bias, grid_hwc)
    out = jax.block_until_ready(out)

    # Pure-JAX reference of the PyTorch forward.
    emb = grid_hwc @ weight.T + bias                             # [H, W, DIM]
    ref = x + jnp.transpose(emb, (2, 0, 1))[None]                # [B, DIM, H, W]

    assert out.shape == (B, DIM, H, W)
    assert jnp.allclose(out, ref, atol=1e-5, rtol=1e-5), "mismatch vs reference"
    print("KERNEL_OK")
</pallas_src>

<mosaic_0001>
module attributes {stable_mosaic.version = 11 : i64} {
  func.func @_soft_pos_embed_kernel(%arg0: i32, %arg1: i32, %arg2: memref<8x256xf32, #tpu.memory_space<vmem>>, %arg3: memref<32x8xf32, #tpu.memory_space<vmem>>, %arg4: memref<1x32x256xf32, #tpu.memory_space<vmem>>, %arg5: memref<1x32x256xf32, #tpu.memory_space<vmem>>, %arg6: memref<32x256xf32, #tpu.memory_space<vmem>>) attributes {dimension_semantics = [#tpu.dimension_semantics<parallel>, #tpu.dimension_semantics<arbitrary>], iteration_bounds = array<i64: 1, 2>, scalar_prefetch = 0 : i64, scratch_operands = 1 : i64, tpu.core_type = #tpu.core_type<tc>, window_params = [{transform_indices = @transform_0, window_bounds = array<i64: 8, 256>}, {pipeline_mode = #tpu.pipeline_mode<synchronous>, transform_indices = @transform_1, window_bounds = array<i64: 32, 8>}, {transform_indices = @transform_2, window_bounds = array<i64: 1, 32, 256>}, {transform_indices = @transform_3, window_bounds = array<i64: 1, 32, 256>}]} {
    %c0_i32 = arith.constant 0 : i32
    %0 = arith.cmpi eq, %arg1, %c0_i32 : i32
    %1 = arith.extui %0 : i1 to i32
    %c0_i32_0 = arith.constant 0 : i32
    %2 = arith.cmpi ne, %1, %c0_i32_0 : i32
    scf.if %2 {
      %c0_8 = arith.constant 0 : index
      %c0_9 = arith.constant 0 : index
      %10 = vector.load %arg3[%c0_8, %c0_9] : memref<32x8xf32, #tpu.memory_space<vmem>>, vector<32x8xf32>
      %c0_10 = arith.constant 0 : index
      %c0_11 = arith.constant 0 : index
      %11 = vector.load %arg2[%c0_10, %c0_11] : memref<8x256xf32, #tpu.memory_space<vmem>>, vector<8x256xf32>
      %cst = arith.constant dense<0.000000e+00> : vector<32x256xf32>
      %12 = tpu.matmul %10, %11, %cst {dimension_numbers = #tpu.dot_dimension_numbers<[1], [0], [0], [1], [0, 0, 1, 1], [], []>} : vector<32x8xf32>, vector<8x256xf32>, vector<32x256xf32> -> vector<32x256xf32>
      %c0_12 = arith.constant 0 : index
      %c0_13 = arith.constant 0 : index
      %13 = vector.load %arg6[%c0_12, %c0_13] : memref<32x256xf32, #tpu.memory_space<vmem>>, vector<32x256xf32>
      tpu.vector_store %arg6[%c0_12, %c0_13], %12 {strides = array<i32>} : memref<32x256xf32, #tpu.memory_space<vmem>>, vector<32x256xf32>,
    } else {
    }
    %c0 = arith.constant 0 : index
    %c0_1 = arith.constant 0 : index
    %c0_2 = arith.constant 0 : index
    %3 = vector.load %arg4[%c0, %c0_1, %c0_2] : memref<1x32x256xf32, #tpu.memory_space<vmem>>, vector<1x32x256xf32>
    %4 = vector.shape_cast %3 : vector<1x32x256xf32> to vector<32x256xf32>
    %c0_3 = arith.constant 0 : index
    %c0_4 = arith.constant 0 : index
    %5 = vector.load %arg6[%c0_3, %c0_4] : memref<32x256xf32, #tpu.memory_space<vmem>>, vector<32x256xf32>
    %6 = arith.addf %4, %5 : vector<32x256xf32>
    %c0_5 = arith.constant 0 : index
    %c0_6 = arith.constant 0 : index
    %c0_7 = arith.constant 0 : index
    %7 = vector.load %arg5[%c0_5, %c0_6, %c0_7] : memref<1x32x256xf32, #tpu.memory_space<vmem>>, vector<1x32x256xf32>
    %8 = vector.shape_cast %7 : vector<1x32x256xf32> to vector<32x256xf32>
    %9 = vector.shape_cast %6 : vector<32x256xf32> to vector<1x32x256xf32>
    tpu.vector_store %arg5[%c0_5, %c0_6, %c0_7], %9 {strides = array<i32>} : memref<1x32x256xf32, #tpu.memory_space<vmem>>, vector<1x32x256xf32>,
    return
  }
  func.func @transform_0(%arg0: i32, %arg1: i32) -> (i32, i32) {
    %c0_i32 = arith.constant 0 : i32
    %c0_i32_0 = arith.constant 0 : i32
    return %c0_i32, %arg0 : i32, i32
  }
  func.func @transform_1(%arg0: i32, %arg1: i32) -> (i32, i32) {
    %c0_i32 = arith.constant 0 : i32
    %c0_i32_0 = arith.constant 0 : i32
    %c0_i32_1 = arith.constant 0 : i32
    return %c0_i32, %c0_i32_0 : i32, i32
  }
  func.func @transform_2(%arg0: i32, %arg1: i32) -> (i32, i32, i32) {
    %c0_i32 = arith.constant 0 : i32
    %c0_i32_0 = arith.constant 0 : i32
    return %arg1, %c0_i32, %arg0 : i32, i32, i32
  }
  func.func @transform_3(%arg0: i32, %arg1: i32) -> (i32, i32, i32) {
    %c0_i32 = arith.constant 0 : i32
    %c0_i32_0 = arith.constant 0 : i32
    return %arg1, %c0_i32, %arg0 : i32, i32, i32
  }
}

</mosaic_0001>

<bundles_post_ra>
// kernel: tpu_custom_call.1
= control target key start
LH: loop header
LB: loop body
LE: loop exit
PB: predicated region body
PF: predicated region fallthrough
CT: control target
= control target key end

     0   :  { %8 = vsyncpa [#allocation4], 0  ;;  %s949_s0 = inlined_call_operand.vmem [shape: f32[8,256], index: 0, kind: input, shape index: {}]   ;;  %s950_s1 = inlined_call_operand.vmem [shape: f32[32,8], index: 1, kind: input, shape index: {}]   ;;  %s951_s2 = inlined_call_operand.hbm [shape: f32[2,32,256], index: 2, kind: input, shape index: {}]   ;;  %s952_s3 = inlined_call_operand.hbm [shape: f32[2,32,256], index: 3, kind: output, shape index: {}]  }
   0x1   :  { %10 = vsyncpa [#allocation4 + $0x1], 0 }
   0x2   :  { %11 = vsyncpa [#allocation5], 0 }
   0x3   :  { %13 = vsyncpa [#allocation5 + $0x1], 0  ;;  %s734_s12 = smov 0   ;;  %s736_s13 = smov 0  }
   0x4   :  { %s738_s14 = smov 0   ;;  %s740_s15 = smov 0  }
   0x5   :  { %s742_s16 = smov 0   ;;  %s744_s17 = smov 0  }
   0x6 LB: > { %s501_s18 = sadd.s32 4294967295, %s705_s17   ;;  %s502_s19 = sadd.s32 4294967294, %s705_s17   ;;  %s705_s17 = sphi %s744_s17, %s19_s17   ;;  %s701_s16 = sphi %s742_s16, %s967_s16   ;;  %s697_s15 = sphi %s740_s15, %s966_s15   ;;  %s693_s14 = sphi %s738_s14, %s965_s14   ;;  %s689_s13 = sphi %s736_s13, %s964_s13   ;;  %s685_s12 = sphi %s734_s12, %s963_s12  }
   0x7   : > { %s28_s20 = sadd.s32 1, %s701_s16  ;;  %s87_s21 = sadd.s32 1, %s693_s14 }
   0x8   : > { %p29_p0 = scmp.ge.s32.totalorder %s28_s20, 2  ;;  %p94_p1 = scmp.ne.s32.totalorder %s693_s14, %s689_s13 }
   0x9   : > { %p95_p2 = scmp.eq.s32.totalorder %s705_s17, 0  ;;  %p100_p3 = scmp.ne.s32.totalorder %s689_s13, %s685_s12 }
   0xa   : > { %s969_s20 = smov (%p29_p0, %s28_s20), 0  ;;  %p101_p5 = scmp.eq.s32.totalorder %s501_s18, 0 }
   0xb   : > { %p775_p4 = por %p95_p2, %p94_p1  ;;  %s82_s23 = ssub.s32 %s701_s16, %s969_s20 }
   0xc   : > { %p126_p6 = scmp.eq.s32.totalorder %s501_s18, 1  ;;  %p85_p7 = scmp.eq.s32.totalorder %s82_s23, 0 }
   0xd   : > { %p781_p8 = por %p101_p5, %p100_p3  ;;  %p132_p10 = scmp.eq.s32.totalorder %s502_s19, 1 }
   0xe   : > { %p785_p9 = por %p126_p6, %p94_p1  ;;  %p538_p13 = scmp.lt.s32.totalorder %s705_s17, 2 }
   0xf   : > { %s790_s26 = scalar_select %p85_p7, %s693_s14, %s87_s21  }
  0x10   : > { %s956_s25 = scalar_select %p785_p9, 1, 0 }
  0x11   : > { %p792_p11 = por %p132_p10, %p100_p3  ;;  %s164_s28 = sand.u32 1, %s693_s14  }
  0x12   : > { %s506_s29 = sshll.u32 %s164_s28, 6  ;;  %s522_s30 = sshll.u32 %s701_s16, 10 }
  0x13   : > { %s957_s27 = scalar_select %p792_p11, 1, 0 }
  0x14   : > { %s803_s6 = scalar_lea.hbm %s951_s2, %s522_s30  ;;  %s168_s7 = scalar_lea.vmem [#allocation3], %s506_s29 }
  0x15   : > { %s177_s8 = sshll.u32 %s168_s7, 4  ;;  %p809_p0 = pnand %p538_p13, %p775_p4  ;;  %s805_s8 = int_to_ptr.vmem [resolvable:$true] %s177_s8 }
  0x16   : > { %s814_s10 = scalar_lea.sflag [#allocation4], %s164_s28  ;;  %s593_s11 = scalar_lea.hbm %s803_s6, 1024 }
  0x17   : > { %p594_p2 = scmp.ne.s32.totalorder %s803_s6, %s593_s11  ;;  %p595_p3 = pneg %p809_p0 }
  0x18   : > { %s598_s21 = scalar_lea.hbm %s951_s2, 2048  ;;  %p599_p4 = scmp.lt.u32.totalorder %s803_s6, %s951_s2 }
  0x19   : > { %p596_p5 = pnand %p595_p3, %p594_p2  ;;  %p600_p7 = scmp.lt.u32.totalorder %s598_s21, %s593_s11 }
  0x1a   : > { %p602_p13 = scmp.lt.u32.totalorder %s593_s11, %s803_s6 }
  0x1b   : > { %p597_p6 = pneg %p596_p5  ;;  %p601_p10 = por %p600_p7, %p599_p4 }
  0x1d   : > { %p603_p12 = por %p602_p13, %p601_p10 }
  0x1f   : > { %p604_p1 = pnand %p603_p12, %p597_p6 }
  0x21   : > { %607 = shalt.err (!%p604_p1)
}
  0x22   : > { %s608_s28 = scalar_lea.vmem %s805_s8, 1024  ;;  %s707_s29 = smov [#allocation3]  }
  0x23   : > { %p609_p2 = scmp.ne.s32.totalorder %s805_s8, %s608_s28  ;;  %s613_s30 = sshll.u32 %s707_s29, 4  ;;  %s614_s30 = int_to_ptr.vmem [resolvable:$false] %s613_s30 }
  0x24   : > { %s615_s4 = scalar_lea.vmem %s614_s30, 2048  ;;  %p616_p9 = scmp.lt.s32.totalorder %s805_s8, %s614_s30 }
  0x25   : > { %p611_p5 = pnand %p609_p2, %p595_p3  ;;  %p617_p4 = scmp.lt.s32.totalorder %s615_s4, %s608_s28 }
  0x27   : > { %p612_p11 = pneg %p611_p5  ;;  %p618_p7 = por %p617_p4, %p616_p9 }
  0x29   : > { %p619_p10 = pnand %p618_p7, %p612_p11 }
  0x2b   : > { %622 = shalt.err (!%p619_p10)
}
  0x2c   : > { %s708_s5 = smov 256   ;;  %s709_s7 = smov 16  }
  0x2d   : > { %533 = dma.hbm_to_vmem [thread:$0]  (!%p809_p0), %s803_s6, 1024, %s805_s8, %s814_s10, %s708_s5, %s708_s5, %s709_s7  }
  0x2e   : > { %p185_p12 = scmp.lt.s32.totalorder %s705_s17, 3  ;;  %p959_p1 = scmp.ge.s32.totalorder %s705_s17, 1 }
  0x30   : > { %p186_p3 = pnand %p959_p1, %p185_p12 }
  0x31   : > { %s846_s11 = sand.u32 (!%p186_p3), 1, %s689_s13  }
  0x32   : > { %189 = sbr.rel (%p186_p3) target bundleno = 307 (0x133), region = 32  ;;  %s510_s18 = sshll.u32 (!%p186_p3), %s846_s11, 6 }
  0x33   : > { %s192_s19 = scalar_lea.sflag (!%p186_p3), [#allocation4], %s846_s11  ;;  %s850_s21 = scalar_lea.vmem (!%p186_p3), [#allocation3], %s510_s18 }
  0x39   : > { %676 = dma.done.wait (%p781_p8), %s192_s19, 1024  }
  0x3a   : > { %678 = vsyncadd (%p781_p8), %s192_s19, 4294966272  ;;  %s856_s6 = scalar_lea.vmem [#allocation6], %s510_s18  ;;  %p512_p9 = scmp.ne.s32.totalorder %s697_s15, 0 }
  0x3b   : > { %v240_v0 = vld [vmem:[%s949_s0 + $0x8] sm:$0xff] (!%p512_p9)  ;;  %v239_v1 = vld [vmem:[%s949_s0] sm:$0xff] (!%p512_p9)  ;;  %vm241_vm0 = vcmask (!%p512_p9), 64512   ;;  %v237_v3 = vld [vmem:[%s950_s1 + $0x10] sm:$0xff] (!%p512_p9)  ;;  %v710_v4 = vmov (!%p512_p9), 0.0  }
  0x3c   : > { %234 = sbr.rel (%p512_p9) target bundleno = 281 (0x119), region = 40  ;;  %254 = vmatprep.subr.mxu0 (!%p512_p9), %v240_v0  ;;  %524 = vmatprep.subr.mxu1 (!%p512_p9), %v240_v0  ;;  %v235_v2 = vld [vmem:[%s950_s1] sm:$0xff] (!%p512_p9)  ;;  %v236_v5 = vld [vmem:[%s950_s1 + $0x8] sm:$0xff] (!%p512_p9)  ;;  %v238_v6 = vld [vmem:[%s950_s1 + $0x18] sm:$0xff] (!%p512_p9) }
  0x3d   : > { %255 = vmatpush1.msra.mxu0 (!%p512_p9), %v239_v1  ;;  %525 = vmatpush1.msra.mxu1 (!%p512_p9), %v239_v1 }
  0x3e   : > { %318 = vmatprep.mubr.f32.mxu0 (!%p512_p9), %v710_v4  ;;  %330 = vmatprep.mubr.f32.mxu1 (!%p512_p9), %v710_v4 }
  0x3f   : > { %513 = vmatmul.mubr.msk.f32.vlgmr.msra.gmra.mrb[0].mxu0 (!%p512_p9), %vm241_vm0, %v235_v2  ;;  %515 = vmatmul.mubr.msk.f32.vlgmr.msra.gmra.mrb[0].mxu1 (!%p512_p9), %vm241_vm0, %v237_v3 }
  0x40   : > { %324 = vmatprep.mubr.f32.mxu0 (!%p512_p9), %v710_v4  ;;  %336 = vmatprep.mubr.f32.mxu1 (!%p512_p9), %v710_v4 }
  0x43   : > { %514 = vmatmul.mubr.msk.f32.gmra.mrb[2].mxu0 %vm241_vm0, %v236_v5  ;;  %516 = vmatmul.mubr.msk.f32.gmra.mrb[2].mxu1 %vm241_vm0, %v238_v6 }
 0x112   : > { %v320_v7 = vpop.f32.mrb[0].mxu0  ;;  %v332_v8 = vpop.f32.mrb[0].mxu1 }
 0x113   : > { %343 = vst [vmem:[#allocation2] sm:$0xff] %v320_v7  ;;  %347 = vst [vmem:[#allocation2 + $0x20] sm:$0xff] %v332_v8  ;;  %v322_v9 = vpop.f32.mrb[1].mxu0  ;;  %v334_v10 = vpop.f32.mrb[1].mxu1 }
 0x114   : > { %344 = vst [vmem:[#allocation2 + $0x8] sm:$0xff] %v322_v9  ;;  %348 = vst [vmem:[#allocation2 + $0x28] sm:$0xff] %v334_v10 }
 0x116   : > { %v326_v11 = vpop.f32.mrb[2].mxu0  ;;  %v338_v12 = vpop.f32.mrb[2].mxu1 }
 0x117   : > { %345 = vst [vmem:[#allocation2 + $0x10] sm:$0xff] %v326_v11  ;;  %349 = vst [vmem:[#allocation2 + $0x30] sm:$0xff] %v338_v12  ;;  %v328_v13 = vpop.f32.mrb[3].mxu0  ;;  %v340_v14 = vpop.f32.mrb[3].mxu1 }
 0x118   : > { %346 = vst [vmem:[#allocation2 + $0x18] sm:$0xff] %v328_v13  ;;  %350 = vst [vmem:[#allocation2 + $0x38] sm:$0xff] %v340_v14 }
 0x119 PF: > { %v351_v15 = vld [vmem:[%s850_s21] sm:$0xff]  ;;  %v352_v17 = vld [vmem:[%s850_s21 + $0x8] sm:$0xff]  ;;  %v353_v20 = vld [vmem:[%s850_s21 + $0x10] sm:$0xff]  ;;  %s523_s18 = sshll.u32 %s697_s15, 10  ;;  %s399_s19 = sshll.u32 %s856_s6, 4  ;;  %s896_s19 = int_to_ptr.vmem [resolvable:$true] %s399_s19 }
 0x11a   : > { %v359_v16 = vld [vmem:[#allocation2] sm:$0xff]  ;;  %v354_v24 = vld [vmem:[%s850_s21 + $0x18] sm:$0xff]  ;;  %v356_v29 = vld [vmem:[%s850_s21 + $0x28] sm:$0xff]  ;;  %s894_s9 = scalar_lea.hbm %s952_s3, %s523_s18  ;;  %s384_s10 = scalar_lea.sflag [#allocation5], %s846_s11 }
 0x11b   : > { %v367_v18 = vadd.f32 %v359_v16, %v351_v15  ;;  %v360_v19 = vld [vmem:[#allocation2 + $0x8] sm:$0xff]  ;;  %v355_v26 = vld [vmem:[%s850_s21 + $0x20] sm:$0xff]  ;;  %v357_v33 = vld [vmem:[%s850_s21 + $0x30] sm:$0xff]  ;;  %p960_p11 = scmp.ne.s32.totalorder %s956_s25, 0  ;;  %s711_s22 = smov [#allocation6]  }
 0x11c   : > { %v368_v22 = vadd.f32 %v360_v19, %v352_v17  ;;  %v363_v28 = vld [vmem:[#allocation2 + $0x20] sm:$0xff]  ;;  %v364_v30 = vld [vmem:[#allocation2 + $0x28] sm:$0xff]  ;;  %v358_v35 = vld [vmem:[%s850_s21 + $0x38] sm:$0xff]  ;;  %s623_s21 = scalar_lea.vmem %s896_s19, 1024  ;;  %s627_s23 = sshll.u32 %s711_s22, 4  ;;  %s628_s23 = int_to_ptr.vmem [resolvable:$false] %s627_s23 }
 0x11d   : > { %375 = vst [vmem:[%s856_s6] sm:$0xff] %v367_v18  ;;  %v371_v31 = vadd.f32 %v363_v28, %v355_v26  ;;  %v372_v32 = vadd.f32 %v364_v30, %v356_v29  ;;  %p624_p8 = scmp.ne.s32.totalorder %s896_s19, %s623_s21  ;;  %s629_s28 = scalar_lea.vmem %s628_s23, 2048 }
 0x11e   : > { %v361_v21 = vld [vmem:[#allocation2 + $0x10] sm:$0xff]  ;;  %376 = vst [vmem:[%s856_s6 + $0x8] sm:$0xff] %v368_v22  ;;  %p630_p13 = scmp.lt.s32.totalorder %s896_s19, %s628_s23  ;;  %p631_p2 = scmp.lt.s32.totalorder %s629_s28, %s623_s21 }
 0x11f   : > { %v369_v23 = vadd.f32 %v361_v21, %v353_v20  ;;  %v362_v25 = vld [vmem:[#allocation2 + $0x18] sm:$0xff]  ;;  %v365_v34 = vld [vmem:[#allocation2 + $0x30] sm:$0xff]  ;;  %379 = vst [vmem:[%s856_s6 + $0x20] sm:$0xff] %v371_v31  ;;  %380 = vst [vmem:[%s856_s6 + $0x28] sm:$0xff] %v372_v32  ;;  %p625_p0 = pnand %p624_p8, %p960_p11 }
 0x120   : > { %v370_v27 = vadd.f32 %v362_v25, %v354_v24  ;;  %v373_v36 = vadd.f32 %v365_v34, %v357_v33  ;;  %v366_v37 = vld [vmem:[#allocation2 + $0x38] sm:$0xff]  ;;  %p632_p5 = por %p631_p2, %p630_p13 }
 0x121   : > { %377 = vst [vmem:[%s856_s6 + $0x10] sm:$0xff] %v369_v23  ;;  %v374_v38 = vadd.f32 %v366_v37, %v358_v35  ;;  %p626_p6 = pneg %p625_p0 }
 0x122   : > { %378 = vst [vmem:[%s856_s6 + $0x18] sm:$0xff] %v370_v27  ;;  %381 = vst [vmem:[%s856_s6 + $0x30] sm:$0xff] %v373_v36 }
 0x123   : > { %382 = vst [vmem:[%s856_s6 + $0x38] sm:$0xff] %v374_v38  ;;  %p633_p4 = pnand %p632_p5, %p626_p6 }
 0x125   : > { %636 = shalt.err (!%p633_p4)
}
 0x126   : > { %s637_s6 = scalar_lea.hbm %s894_s9, 1024  ;;  %s641_s30 = scalar_lea.hbm %s952_s3, 2048 }
 0x127   : > { %p638_p7 = scmp.ne.s32.totalorder %s894_s9, %s637_s6  ;;  %p642_p1 = scmp.lt.u32.totalorder %s894_s9, %s952_s3 }
 0x128   : > { %p643_p3 = scmp.lt.u32.totalorder %s641_s30, %s637_s6  ;;  %p645_p8 = scmp.lt.u32.totalorder %s637_s6, %s894_s9 }
 0x129   : > { %p639_p10 = pnand %p638_p7, %p960_p11 }
 0x12a   : > { %p644_p9 = por %p643_p3, %p642_p1 }
 0x12b   : > { %p640_p12 = pneg %p639_p10 }
 0x12c   : > { %p646_p0 = por %p645_p8, %p644_p9 }
 0x12e   : > { %p647_p6 = pnand %p646_p0, %p640_p12 }
 0x130   : > { %650 = shalt.err (!%p647_p6)
}
 0x131   : > { %s712_s7 = smov 256   ;;  %s713_s18 = smov 16  }
 0x132   : > { %528 = dma.vmem_to_hbm [thread:$0]  (%p960_p11), %s896_s19, 1024, %s894_s9, %s384_s10, %s712_s7, %s712_s7, %s713_s18  }
 0x133 PF: > { %s414_s15 = sand.u32 1, %s685_s12   ;;  %p961_p13 = scmp.ne.s32.totalorder %s957_s27, 0 }
 0x134   : > { %p962_p2 = scmp.ge.s32.totalorder %s705_s17, 2  ;;  %s415_s8 = scalar_lea.sflag [#allocation5], %s414_s15 }
 0x136   : > { %p535_p5 = pnand %p962_p2, %p961_p13 }
 0x138   : > { %680 = dma.done.wait (!%p535_p5), %s415_s8, 1024  }
 0x139   : > { %682 = vsyncadd (!%p535_p5), %s415_s8, 4294966272  ;;  %s19_s17 = sadd.s32 1, %s705_s17   ;;  %s963_s12 = smov %s689_s13 }
 0x13a   : > { %p16_p4 = scmp.ge.s32.totalorder %s19_s17, 4   ;;  %s964_s13 = smov %s693_s14 }
 0x13b   : > { %s965_s14 = smov %s790_s26  ;;  %s966_s15 = smov %s701_s16 }
 0x13c   : > { %s967_s16 = smov %s969_s20  ;;  %18 = sbr.rel (!%p16_p4) target bundleno = 6 (0x6), region = 84 }
 0x143   :  { %420 = vsyncpa [#allocation4], 1 }
 0x144   :  { %422 = vsyncpa [#allocation4 + $0x1], 1 }
 0x145   :  { %423 = vsyncpa [#allocation5], 1 }
 0x146   :  { %425 = vsyncpa [#allocation5 + $0x1], 1 }

</bundles_post_ra>
